<compile_context>
chip_gen: v5e
topology: v5e:2x2
jax: 0.10.0
libtpu: 0.0.40
codegen_flags: <defaults>
</compile_context>

<pallas_src>
import jax
import jax.numpy as jnp
from jax.experimental import pallas as pl
from jax.experimental.pallas import tpu as pltpu


def _embed_score_gather_kernel(ids_ref, emb_ref, w_ref, b_ref, out_ref):
    # ids_ref : VMEM (1, T)  int32   token ids for this block (padded with 0)
    # emb_ref : VMEM (V, D)  f32     embedding table (resident across steps)
    # w_ref   : VMEM (1, D)  f32     Linear.weight (out_features=1)
    # b_ref   : SMEM (1, 1)  f32     Linear.bias
    # out_ref : VMEM (1, T)  f32     out[0, t] = <emb[ids[t]], w> + b
    V = emb_ref.shape[0]
    T = ids_ref.shape[1]

    # Fold Linear into a per-vocab score table: scores[v] = <emb[v, :], w> + b.
    # VPU elementwise multiply + XLU lane reduce; deliberately not an MXU
    # matmul (a 1-column matmul wastes 127/128+ of the MXU).
    scores = (
        jnp.sum(emb_ref[...] * w_ref[...], axis=-1, keepdims=True)
        + b_ref[0, 0]
    )  # (V, 1) f32

    # One-hot gather of the T token scores: out[0, t] = scores[ids[0, t]].
    ids = ids_ref[...]                                      # (1, T) int32
    row = jax.lax.broadcasted_iota(jnp.int32, (V, T), 0)    # vocab id per row
    onehot = row == ids                                     # (V, T) bool
    out_ref[...] = jnp.sum(
        jnp.where(onehot, scores, jnp.float32(0.0)), axis=0, keepdims=True
    )  # (1, T) lane-dense store


def simple_network_forward(token_ids, emb_table, weight, bias, *, block_tokens=128):
    """token_ids: (B, S) int, emb_table: (V, D) f32,
    weight: (1, D) f32 (PyTorch Linear.weight), bias: (1,) f32 -> (B, S, 1) f32."""
    B, S = token_ids.shape
    V, D = emb_table.shape
    N = B * S

    T = block_tokens
    num_blocks = pl.cdiv(N, T)
    n_pad = num_blocks * T

    ids_flat = token_ids.reshape(N).astype(jnp.int32)
    # Pad with index 0 (valid row); padded lanes are sliced away afterwards.
    ids_padded = jnp.pad(ids_flat, (0, n_pad - N)).reshape(num_blocks, T)

    emb_f32 = emb_table.astype(jnp.float32)
    w_f32 = weight.astype(jnp.float32)
    b_2d = bias.reshape(1, 1).astype(jnp.float32)

    grid_spec = pltpu.PrefetchScalarGridSpec(
        num_scalar_prefetch=0,
        grid=(num_blocks,),
        in_specs=[
            # Token-id block for this grid step (lane-dense, T = 128).
            pl.BlockSpec((1, T), lambda i: (i, 0)),
            # Full embedding table, VMEM-resident (constant block index).
            pl.BlockSpec((V, D), lambda i: (0, 0)),
            # Linear weight, resident.
            pl.BlockSpec((1, D), lambda i: (0, 0)),
            # Bias scalar in SMEM.
            pl.BlockSpec(memory_space=pltpu.MemorySpace.SMEM),
        ],
        out_specs=pl.BlockSpec((1, T), lambda i: (i, 0)),
    )

    out_padded = pl.pallas_call(
        _embed_score_gather_kernel,
        out_shape=jax.ShapeDtypeStruct((num_blocks, T), jnp.float32),
        grid_spec=grid_spec,
        compiler_params=pltpu.CompilerParams(
            # Unique output block per step -> safe to shard across TCs (v7x).
            dimension_semantics=("parallel",)
        ),
    )(ids_padded, emb_f32, w_f32, b_2d)

    return out_padded.reshape(n_pad)[:N].reshape(B, S, 1)


if __name__ == "__main__":
    # Small shapes consistent with the module: vocab=32, embedding_dim=32,
    # batch=2, seq=8.
    V, D = 32, 32
    B, S = 2, 8

    key = jax.random.PRNGKey(0)
    k_emb, k_w, k_b, k_ids = jax.random.split(key, 4)

    emb_table = jax.random.normal(k_emb, (V, D), dtype=jnp.float32)
    weight = jax.random.normal(k_w, (1, D), dtype=jnp.float32) * 0.1   # Linear.weight
    bias = jax.random.normal(k_b, (1,), dtype=jnp.float32) * 0.1       # Linear.bias
    token_ids = jax.random.randint(k_ids, (B, S), 0, V, dtype=jnp.int32)

    out = simple_network_forward(token_ids, emb_table, weight, bias)
    out = jax.block_until_ready(out)

    # Pure-JAX reference of the PyTorch forward: embeddings(batch) @ W.T + b.
    ref = emb_table[token_ids] @ weight.T + bias                       # (B, S, 1)
    assert out.shape == (B, S, 1), out.shape
    assert jnp.allclose(out, ref, atol=1e-5, rtol=1e-5), "mismatch vs reference"

    print("KERNEL_OK")
</pallas_src>

<mosaic_0001>
module attributes {stable_mosaic.version = 11 : i64} {
  func.func @_embed_score_gather_kernel(%arg0: i32, %arg1: memref<1x128xi32, #tpu.memory_space<vmem>>, %arg2: memref<32x32xf32, #tpu.memory_space<vmem>>, %arg3: memref<1x32xf32, #tpu.memory_space<vmem>>, %arg4: memref<1x1xf32, #tpu.memory_space<smem>>, %arg5: memref<1x128xf32, #tpu.memory_space<vmem>>) attributes {dimension_semantics = [#tpu.dimension_semantics<parallel>], iteration_bounds = array<i64: 1>, scalar_prefetch = 0 : i64, scratch_operands = 0 : i64, tpu.core_type = #tpu.core_type<tc>, window_params = [{transform_indices = @transform_0, window_bounds = array<i64: 1, 128>}, {pipeline_mode = #tpu.pipeline_mode<synchronous>, transform_indices = @transform_1, window_bounds = array<i64: 32, 32>}, {pipeline_mode = #tpu.pipeline_mode<synchronous>, transform_indices = @transform_2, window_bounds = array<i64: 1, 32>}, {transform_indices = @transform_3, window_bounds = array<i64: 1, 1>}, {transform_indices = @transform_4, window_bounds = array<i64: 1, 128>}]} {
    %c0 = arith.constant 0 : index
    %c0_0 = arith.constant 0 : index
    %0 = vector.load %arg2[%c0, %c0_0] : memref<32x32xf32, #tpu.memory_space<vmem>>, vector<32x32xf32>
    %c0_1 = arith.constant 0 : index
    %c0_2 = arith.constant 0 : index
    %1 = vector.load %arg3[%c0_1, %c0_2] : memref<1x32xf32, #tpu.memory_space<vmem>>, vector<1x32xf32>
    %2 = vector.broadcast %1 : vector<1x32xf32> to vector<32x32xf32>
    %3 = arith.mulf %0, %2 : vector<32x32xf32>
    %cst = arith.constant dense<0.000000e+00> : vector<32xf32>
    %4 = vector.multi_reduction <add>, %3, %cst [1] : vector<32x32xf32> to vector<32xf32>
    %5 = vector.shape_cast %4 : vector<32xf32> to vector<32x1xf32>
    %c0_3 = arith.constant 0 : index
    %c0_4 = arith.constant 0 : index
    %6 = memref.load %arg4[%c0_3, %c0_4] : memref<1x1xf32, #tpu.memory_space<smem>>
    %7 = vector.broadcast %6 : f32 to vector<32x1xf32>
    %8 = arith.addf %5, %7 : vector<32x1xf32>
    %c0_5 = arith.constant 0 : index
    %c0_6 = arith.constant 0 : index
    %9 = vector.load %arg1[%c0_5, %c0_6] : memref<1x128xi32, #tpu.memory_space<vmem>>, vector<1x128xi32>
    %10 = tpu.iota {dimensions = array<i32: 0>} : vector<32x128xi32>
    %11 = vector.broadcast %9 : vector<1x128xi32> to vector<32x128xi32>
    %12 = arith.cmpi eq, %10, %11 : vector<32x128xi32>
    %cst_7 = arith.constant 0.000000e+00 : f32
    %13 = vector.shape_cast %8 : vector<32x1xf32> to vector<32x1xf32>
    %14 = vector.broadcast %13 : vector<32x1xf32> to vector<32x128xf32>
    %15 = vector.broadcast %cst_7 : f32 to vector<32x128xf32>
    %16 = arith.select %12, %14, %15 : vector<32x128xi1>, vector<32x128xf32>
    %cst_8 = arith.constant dense<0.000000e+00> : vector<128xf32>
    %17 = vector.multi_reduction <add>, %16, %cst_8 [0] : vector<32x128xf32> to vector<128xf32>
    %18 = vector.shape_cast %17 : vector<128xf32> to vector<1x128xf32>
    %c0_9 = arith.constant 0 : index
    %c0_10 = arith.constant 0 : index
    %19 = vector.load %arg5[%c0_9, %c0_10] : memref<1x128xf32, #tpu.memory_space<vmem>>, vector<1x128xf32>
    tpu.vector_store %arg5[%c0_9, %c0_10], %18 {strides = array<i32>} : memref<1x128xf32, #tpu.memory_space<vmem>>, vector<1x128xf32>,
    return
  }
  func.func @transform_0(%arg0: i32) -> (i32, i32) {
    %c0_i32 = arith.constant 0 : i32
    %c0_i32_0 = arith.constant 0 : i32
    return %arg0, %c0_i32 : i32, i32
  }
  func.func @transform_1(%arg0: i32) -> (i32, i32) {
    %c0_i32 = arith.constant 0 : i32
    %c0_i32_0 = arith.constant 0 : i32
    %c0_i32_1 = arith.constant 0 : i32
    return %c0_i32, %c0_i32_0 : i32, i32
  }
  func.func @transform_2(%arg0: i32) -> (i32, i32) {
    %c0_i32 = arith.constant 0 : i32
    %c0_i32_0 = arith.constant 0 : i32
    %c0_i32_1 = arith.constant 0 : i32
    return %c0_i32, %c0_i32_0 : i32, i32
  }
  func.func @transform_3(%arg0: i32) -> (i32, i32) {
    %c0_i32 = arith.constant 0 : i32
    %c0_i32_0 = arith.constant 0 : i32
    %c0_i32_1 = arith.constant 0 : i32
    return %c0_i32, %c0_i32_0 : i32, i32
  }
  func.func @transform_4(%arg0: i32) -> (i32, i32) {
    %c0_i32 = arith.constant 0 : i32
    %c0_i32_0 = arith.constant 0 : i32
    return %arg0, %c0_i32 : i32, i32
  }
}

</mosaic_0001>

<bundles_post_ra>
// kernel: tpu_custom_call.1
= control target key start
LH: loop header
LB: loop body
LE: loop exit
PB: predicated region body
PF: predicated region fallthrough
CT: control target
= control target key end

     0   :  { %10 = vsyncpa [#allocation4], 0  ;;  %s210_s0 = inlined_call_operand.vmem [shape: s32[1,128], index: 0, kind: input, shape index: {}]   ;;  %s211_s1 = inlined_call_operand.hbm [shape: f32[32,32], index: 1, kind: input, shape index: {}]   ;;  %s212_s2 = inlined_call_operand.vmem [shape: f32[1,32], index: 2, kind: input, shape index: {}]   ;;  %s213_s3 = inlined_call_operand.<no memory space> [shape: f32[1,1], index: 3, kind: input, shape index: {}]   ;;  %s214_s4 = inlined_call_operand.hbm [shape: f32[1,128], index: 4, kind: output, shape index: {}]  }
   0x1   :  { %11 = vsyncpa [#allocation5], 0  ;;  %s18_s17 = sshll.u32 %s211_s1, 4  ;;  %s166_s18 = smov [#allocation3]   ;;  %s19_s17 = int_to_ptr.hbm [resolvable:$true] %s18_s17 }
   0x2   :  { %s20_s19 = sshll.u32 %s166_s18, 4  ;;  %s167_s20 = smov 128   ;;  %s21_s19 = int_to_ptr.vmem [resolvable:$true] %s20_s19 }
   0x3   :  { %s168_s21 = smov 8  }
   0x4   :  { %26 = dma.hbm_to_vmem [thread:$0]  %s19_s17, 512, %s21_s19, [#allocation4], %s167_s20, %s167_s20, %s168_s21  }
   0x5   :  { %162 = dma.done.wait [#allocation4], 512  }
   0x6   :  { %163 = vsyncadd [#allocation4], 4294966784  ;;  %v35_v0 = vld [vmem:[#allocation3] sm:$0xff]  ;;  %vm47_vm0 = vcmask 261120   ;;  %v37_v2 = vld [vmem:[#allocation3 + $0x10] sm:$0xff]  ;;  %v67_v13 = vlaneseq  ;;  %v61_v17 = vstv %s213_s3  ;;  %s98_s28 = sshll.u32 %s214_s4, 4  ;;  %s99_s28 = int_to_ptr.hbm [resolvable:$true] %s98_s28 }
   0x7   :  { %v112_v1 = vld [vmem:[%s212_s2] ss:$0 sm:$0xff]  ;;  %v36_v5 = vld [vmem:[#allocation3 + $0x8] sm:$0xff]  ;;  %v38_v6 = vld [vmem:[#allocation3 + $0x18] sm:$0xff] }
   0x8   :  { %v43_v3 = vmul.f32 %v112_v1, %v35_v0  ;;  %v45_v4 = vmul.f32 %v112_v1, %v37_v2  ;;  %v44_v9 = vmul.f32 %v112_v1, %v36_v5  ;;  %v46_v10 = vmul.f32 %v112_v1, %v38_v6  ;;  %v113_v18 = vld [vmem:[%s210_s0] ss:$0 sm:$0xff]  ;;  %s169_s0 = smov [#allocation6]  }
   0x9   :  { %v68_v16 = vshrl.u32 %v67_v13, 7  ;;  %s96_s3 = sshll.u32 %s169_s0, 4  ;;  %s97_s3 = int_to_ptr.vmem [resolvable:$true] %s96_s3 }
   0xa   :  { %v48_v7 = vsel %vm47_vm0, %v43_v3, 0.0  ;;  %v54_v8 = vsel %vm47_vm0, %v45_v4, 0.0  ;;  %v51_v11 = vsel %vm47_vm0, %v44_v9, 0.0  ;;  %v57_v12 = vsel %vm47_vm0, %v46_v10, 0.0 }
   0xb   :  { %49 = vadd.xlane.f32.xlu0 %v48_v7  ;;  %55 = vadd.xlane.f32.xlu1 %v54_v8  ;;  %v69_v19 = vadd.s32 8, %v68_v16  ;;  %v70_v20 = vadd.s32 16, %v68_v16  ;;  %v71_v21 = vadd.s32 24, %v68_v16  ;;  %vm73_vm1 = vcmp.eq.s32.totalorder %v68_v16, %v113_v18 }
   0xd   :  { %vm74_vm2 = vcmp.eq.s32.totalorder %v69_v19, %v113_v18  ;;  %vm75_vm3 = vcmp.eq.s32.totalorder %v70_v20, %v113_v18  ;;  %vm76_vm4 = vcmp.eq.s32.totalorder %v71_v21, %v113_v18 }
  0x13   :  { %52 = vadd.xlane.f32.xlu0 %v51_v11  ;;  %58 = vadd.xlane.f32.xlu1 %v57_v12 }
  0x7e   :  { %v50_v14 = vpop.xlane.xlu0 %49  ;;  %v56_v15 = vpop.xlane.xlu1 %55 }
  0x7f   :  { %v62_v22 = vadd.f32 %v61_v17, %v50_v14  ;;  %v64_v25 = vadd.f32 %v61_v17, %v56_v15 }
  0x81   :  { %v77_v28 = vsel %vm73_vm1, %v62_v22, 0.0  ;;  %v79_v31 = vsel %vm75_vm3, %v64_v25, 0.0 }
  0x86   :  { %v53_v23 = vpop.xlane.xlu0 %52  ;;  %v59_v24 = vpop.xlane.xlu1 %58 }
  0x87   :  { %v63_v26 = vadd.f32 %v61_v17, %v53_v23  ;;  %v65_v27 = vadd.f32 %v61_v17, %v59_v24 }
  0x89   :  { %v78_v29 = vsel %vm74_vm2, %v63_v26, 0.0  ;;  %v80_v32 = vsel %vm76_vm4, %v65_v27, 0.0 }
  0x8a   :  { %v81_v30 = vadd.f32 %v78_v29, %v77_v28 }
  0x8c   :  { %v82_v33 = vadd.f32 %v81_v30, %v79_v31 }
  0x8e   :  { %v83_v34 = vadd.f32 %v82_v33, %v80_v32 }
  0x90   :  { %v84_v35 = vrot.slane %v83_v34, 4 }
  0x92   :  { %v85_v36 = vadd.f32 %v84_v35, %v83_v34 }
  0x94   :  { %v86_v37 = vrot.slane %v85_v36, 2 }
  0x96   :  { %v87_v38 = vadd.f32 %v86_v37, %v85_v36 }
  0x98   :  { %v88_v39 = vrot.slane %v87_v38, 1 }
  0x9a   :  { %v89_v40 = vadd.f32 %v88_v39, %v87_v38 }
  0x9c   :  { %90 = vst [vmem:[#allocation6] sm:$0x1] %v89_v40 }
  0x9d   :  { %101 = dma.vmem_to_hbm [thread:$0]  %s97_s3, 16, %s99_s28, [#allocation5]  }
  0x9e   :  { %164 = dma.done.wait [#allocation5], 16  }
  0x9f   :  { %165 = vsyncadd [#allocation5], 4294967280 }
  0xa0   :  { %106 = vsyncpa [#allocation4], 1 }
  0xa1   :  { %107 = vsyncpa [#allocation5], 1 }

</bundles_post_ra>
